<compile_context>
chip_gen: v7x
topology: tpu7x:2x2x1
jax: 0.10.0
libtpu: 0.0.40
codegen_flags: <defaults>
</compile_context>

<pallas_src>
import math
from collections import OrderedDict

import jax
import jax.numpy as jnp
import numpy as np
from jax.experimental import pallas as pl
from jax.experimental.pallas import tpu as pltpu


# ------------------------- hardware-aware budgeting -------------------------

def _vmem_budget_bytes():
    """~80% of physical VMEM per core (leaves headroom for compiler scratch)."""
    cap = 64 * 1024 * 1024                       # safe fallback (v7x-sized)
    try:
        info = pltpu.get_tpu_info()
        cap = int(getattr(info, "vmem_capacity_bytes", cap))
    except Exception:
        pass
    return max(32 << 20, min(int(cap * 0.8), cap - (8 << 20)))


_VMEM_BUDGET = _vmem_budget_bytes()


def _sublanes(dtype):
    """Packed sublane count per vreg tile for this dtype (8 f32 / 16 bf16 / 32 i8)."""
    return max(8, 32 // np.dtype(dtype).itemsize)


# ----------------------------- Pallas kernels ------------------------------

def _conv1x1_kernel(x_ref, w_ref, b_ref, o_ref):
    # x: (TM, Cin), w: (Cin, Cout), b: (1, Cout) -> o: (TM, Cout)
    acc = jnp.dot(x_ref[...], w_ref[...], preferred_element_type=jnp.float32)
    o_ref[...] = (acc + b_ref[...]).astype(o_ref.dtype)


def _conv1x1_add_kernel(x_ref, w_ref, b_ref, add_ref, o_ref):
    # fused lateral 1x1 conv + bias + top-down add
    acc = jnp.dot(x_ref[...], w_ref[...], preferred_element_type=jnp.float32)
    o_ref[...] = (acc + b_ref[...] + add_ref[...]).astype(o_ref.dtype)


def _make_conv3x3_kernel(TH, Wp, WIN, fuse_kx):
    """3x3 conv over a flat (rows*padded_width, Cin) tile.

    The padded/flattened input lives in HBM; each grid step DMAs one
    overlapping (WIN, Cin) window (tile + halo) into a 2-slot VMEM scratch and
    forms the taps as shifted slices of that window.  The DMA for row-tile
    t+1 of the same image is issued before computing tile t.
    """
    TW = TH * Wp

    def kernel(x_hbm, w_ref, b_ref, o_ref, xs, sem):
        n = pl.program_id(0)           # batch element
        t = pl.program_id(1)           # row tile within this image
        nH = pl.num_programs(1)
        slot = t % 2

        def dma(tt, s):
            # one overlapping window: TW tile rows + halo, starting at tt*TW
            return pltpu.make_async_copy(
                x_hbm.at[n, pl.ds(tt * TW, WIN)], xs.at[s], sem.at[s])

        # Prime the pipeline at the start of every image (keeps the batch axis
        # self-contained, so it can stay "parallel" for v7x megacore split).
        @pl.when(t == 0)
        def _():
            dma(0, 0).start()

        dma(t, slot).wait()            # current window is now in VMEM

        @pl.when(t + 1 < nH)           # prefetch next tile of the same image
        def _():
            dma(t + 1, 1 - slot).start()

        def compute(s):                # s: static slot index (0 or 1)
            if fuse_kx:
                # 3 matmuls (K = 3*Cin): lane-concat the three kx shifts per ky.
                acc = None
                for ky in range(3):
                    off = ky * Wp
                    tap = jnp.concatenate(
                        [xs[s, off + kx:off + kx + TW, :] for kx in range(3)],
                        axis=-1)                               # (TW, 3*Cin)
                    d = jnp.dot(tap, w_ref[ky],
                                preferred_element_type=jnp.float32)
                    acc = d if acc is None else acc + d
            else:
                # small / unaligned Cin: 9 matmuls on shifted flat views.
                acc = None
                for ky in range(3):
                    for kx in range(3):
                        off = ky * Wp + kx
                        d = jnp.dot(xs[s, off:off + TW, :], w_ref[ky, kx],
                                    preferred_element_type=jnp.float32)
                        acc = d if acc is None else acc + d
            # TODO(synk): on v7x use matmul_push_rhs/matmul_acc_lhs/matmul_pop
            # to accumulate the taps inside the MRB instead of VPU adds.
            o_ref[0] = (acc + b_ref[...]).astype(o_ref.dtype)

        # Static-slot duplication keeps every in-VMEM slice static for Mosaic.
        @pl.when(slot == 0)
        def _():
            compute(0)

        @pl.when(slot == 1)
        def _():
            compute(1)

    return kernel


# ------------------------------- wrappers -----------------------------------

def conv1x1(x_nhwc, w, b, add_nhwc=None, row_tile=None):
    """1x1 conv (pointwise) + bias (+ optional elementwise add), NHWC."""
    N, H, W, Cin = x_nhwc.shape
    Cout = w.shape[1]
    M = N * H * W
    has_add = add_nhwc is not None
    esz = np.dtype(x_nhwc.dtype).itemsize

    if row_tile is None:
        # budget-derived tile: double-buffered input/output(/add) rows + weights
        per_row = esz * 2 * (Cin + Cout + (Cout if has_add else 0))
        fixed = esz * 2 * (Cin * Cout + Cout)
        avail = max(_VMEM_BUDGET // 2 - fixed, per_row * 64)
        row_tile = max(256, min(4096, int(avail // per_row)))
        row_tile = (row_tile // 8) * 8

    # full-extent block when small (always legal), else a multiple-of-8 tile
    TM = M if M <= row_tile else row_tile
    grid = (pl.cdiv(M, TM),)

    xf = x_nhwc.reshape(M, Cin)
    bf = b.reshape(1, Cout)

    # TODO(synk): mark w/b specs pipeline_mode=pl.Buffered(1) (single buffer for
    # constant-index blocks) once buffer_count=1 is verified on this JAX build.
    # TODO(synk): for very wide Cin (e.g. 2048) add an "arbitrary" K grid axis
    # with a persistent f32 acc scratch instead of shrinking TM.
    x_spec = pl.BlockSpec((TM, Cin), lambda i: (i, 0))
    w_spec = pl.BlockSpec((Cin, Cout), lambda i: (0, 0))   # VMEM-resident
    b_spec = pl.BlockSpec((1, Cout), lambda i: (0, 0))     # VMEM-resident
    o_spec = pl.BlockSpec((TM, Cout), lambda i: (i, 0))
    cparams = pltpu.CompilerParams(
        dimension_semantics=("parallel",), vmem_limit_bytes=_VMEM_BUDGET)

    if not has_add:
        out = pl.pallas_call(
            _conv1x1_kernel,
            out_shape=jax.ShapeDtypeStruct((M, Cout), x_nhwc.dtype),
            grid=grid,
            in_specs=[x_spec, w_spec, b_spec],
            out_specs=o_spec,
            compiler_params=cparams,
        )(xf, w, bf)
    else:
        addf = add_nhwc.reshape(M, Cout)
        a_spec = pl.BlockSpec((TM, Cout), lambda i: (i, 0))
        out = pl.pallas_call(
            _conv1x1_add_kernel,
            out_shape=jax.ShapeDtypeStruct((M, Cout), x_nhwc.dtype),
            grid=grid,
            in_specs=[x_spec, w_spec, b_spec, a_spec],
            out_specs=o_spec,
            compiler_params=cparams,
        )(xf, w, bf, addf)
    return out.reshape(N, H, W, Cout)


def conv3x3(x_nhwc, w_hwio, b, row_tile=None):
    """3x3 conv, stride 1, padding 1, NHWC.  w_hwio: (3, 3, Cin, Cout)."""
    N, H, W, Cin = x_nhwc.shape
    Cout = w_hwio.shape[-1]
    Wp = W + 2                               # padded width (1 col left/right)
    sub = _sublanes(x_nhwc.dtype)            # dtype-aware sublane count
    esz = np.dtype(x_nhwc.dtype).itemsize

    HALO = 2 * Wp + 2                        # flat rows past each tile base
    HALOP = -(-HALO // sub) * sub            # halo rounded up to sublanes

    if row_tile is None:
        # budget-derived TH: double-buffered input window + output tile + weights
        per_row = esz * Wp * (2 * Cin + 2 * Cout)
        fixed = esz * (2 * (9 * Cin * Cout + Cout) + 2 * HALOP * Cin)
        avail = max(_VMEM_BUDGET // 2 - fixed, per_row * 8)
        row_tile = max(8, min(64, int(avail // per_row)))

    # (TH * Wp) must be a multiple of the sublane count so flat blocks obey the
    # packed-tiling rule (channel dim is full-extent, always legal).
    step = sub // math.gcd(Wp, sub)
    TH = min(H, row_tile)
    TH = ((TH + step - 1) // step) * step
    nH = pl.cdiv(H, TH)
    Hq = nH * TH
    TW = TH * Wp
    WIN = TW + HALOP                          # per-step DMA window (rows)

    # Invariant (ties the halo to the final trim): output flat position
    # p = y*Wp + x only reads padded-input flat positions p .. p + 2*Wp + 2, so
    # a window of TW + HALO rows starting at the tile base covers all taps; the
    # last 2 columns of each output row and rows H..Hq-1 hold wrap-around
    # values and are removed by the [:, :H, :W, :] trim below.
    assert HALO == 2 * Wp + 2 and HALOP >= HALO
    assert TW % sub == 0 and WIN % sub == 0

    # zero pad: 1 row top, enough rows at the bottom to cover the last tile's
    # DMA window, 1 col left/right; flatten (rows, width) -> flat rows.
    need_rows = -(-(Hq * Wp + HALOP) // Wp)   # total padded row count
    pad_bottom = need_rows - H - 1
    xp = jnp.pad(x_nhwc, ((0, 0), (1, pad_bottom), (1, 1), (0, 0)))
    xflat = xp.reshape(N, need_rows * Wp, Cin)

    bf = b.reshape(1, Cout)

    # Lane-concatenated (K = 3*Cin) taps only when Cin is lane-aligned
    # (production FPN: Cin = Cout = 256); small/test channels keep 9 matmuls.
    fuse_kx = (Cin % 128 == 0)
    if fuse_kx:
        w_arg = w_hwio.reshape(3, 3 * Cin, Cout)
        w_spec = pl.BlockSpec((3, 3 * Cin, Cout), lambda n, t: (0, 0, 0))
    else:
        w_arg = w_hwio
        w_spec = pl.BlockSpec((3, 3, Cin, Cout), lambda n, t: (0, 0, 0, 0))

    # NOTE: for small out_channels the output is lane-sparse (masked stores);
    # production Cout=256 is already lane-dense, so no padding is done here.
    out_flat = pl.pallas_call(
        _make_conv3x3_kernel(TH, Wp, WIN, fuse_kx),
        out_shape=jax.ShapeDtypeStruct((N, Hq * Wp, Cout), x_nhwc.dtype),
        grid=(N, nH),
        in_specs=[
            pl.BlockSpec(memory_space=pl.ANY),           # stays in HBM
            w_spec,                                      # VMEM-resident
            pl.BlockSpec((1, Cout), lambda n, t: (0, 0)),
        ],
        out_specs=pl.BlockSpec((1, TW, Cout), lambda n, t: (n, t, 0)),
        scratch_shapes=[
            pltpu.VMEM((2, WIN, Cin), x_nhwc.dtype),     # double-buffered window
            pltpu.SemaphoreType.DMA((2,)),
        ],
        compiler_params=pltpu.CompilerParams(
            dimension_semantics=("parallel", "arbitrary"),
            vmem_limit_bytes=_VMEM_BUDGET),
    )(xflat, w_arg, bf)

    # Drop the 2 padded columns per row and any extra bottom rows.
    return out_flat.reshape(N, Hq, Wp, Cout)[:, :H, :W, :]


def nearest_upsample_nhwc(x, out_hw):
    """Matches F.interpolate(mode='nearest'): src = floor(dst * in / out)."""
    N, H, W, C = x.shape
    Ho, Wo = out_hw
    idx_h = (jnp.arange(Ho) * H) // Ho
    idx_w = (jnp.arange(Wo) * W) // Wo
    return x[:, idx_h][:, :, idx_w]


# ------------------------------ FPN module ----------------------------------

def init_fpn_params(key, in_channels_list, out_channels):
    """kaiming_uniform_(a=1) for conv weights, zero biases (as in __init__)."""
    def kaiming_uniform(k, shape, fan_in, a=1.0):
        bound = math.sqrt(6.0 / ((1.0 + a * a) * fan_in))
        return jax.random.uniform(k, shape, jnp.float32, -bound, bound)

    params = {"inner_w": [], "inner_b": [], "layer_w": [], "layer_b": []}
    for cin in in_channels_list:
        key, k1, k2 = jax.random.split(key, 3)
        # inner: 1x1 conv, weight stored as (Cin, Cout); fan_in = Cin * 1 * 1
        params["inner_w"].append(kaiming_uniform(k1, (cin, out_channels), cin))
        params["inner_b"].append(jnp.zeros((out_channels,), jnp.float32))
        # layer: 3x3 conv, weight stored HWIO (3,3,Cout,Cout); fan_in = Cout*9
        params["layer_w"].append(
            kaiming_uniform(k2, (3, 3, out_channels, out_channels),
                            out_channels * 9))
        params["layer_b"].append(jnp.zeros((out_channels,), jnp.float32))
    return params


def fpn_forward(x_dict, params):
    """Forward pass of FeaturePyramidNetwork. x_dict: OrderedDict of NCHW."""
    names = list(x_dict.keys())
    xs = [jnp.transpose(x_dict[k], (0, 2, 3, 1)) for k in names]  # NCHW -> NHWC

    # coarsest level: no top-down add -> no-add 1x1 kernel (no zeros tensor)
    last_inner = conv1x1(xs[-1], params["inner_w"][-1], params["inner_b"][-1])
    results = [conv3x3(last_inner, params["layer_w"][-1], params["layer_b"][-1])]

    for idx in range(len(xs) - 2, -1, -1):
        feat_hw = xs[idx].shape[1:3]
        # TODO(synk): fuse the nearest-neighbor upsample into the lateral 1x1
        # kernel (coarse-block index_map + in-kernel 2x repeat) to avoid this
        # HBM round trip of the top-down tensor.
        inner_top_down = nearest_upsample_nhwc(last_inner, feat_hw)
        # inner_lateral + inner_top_down fused into the tiled 1x1 kernel
        last_inner = conv1x1(xs[idx], params["inner_w"][idx],
                             params["inner_b"][idx], add_nhwc=inner_top_down)
        results.insert(0, conv3x3(last_inner, params["layer_w"][idx],
                                  params["layer_b"][idx]))

    # back to NCHW, same keys / order as input
    return OrderedDict(
        (k, jnp.transpose(v, (0, 3, 1, 2))) for k, v in zip(names, results))


# ------------------------------ reference -----------------------------------

def _ref_fpn_forward(x_dict, params):
    """Pure-JAX reference (lax.conv) for numerical validation."""
    def conv(x, w, b, pad):
        y = jax.lax.conv_general_dilated(
            x, w, window_strides=(1, 1), padding=pad,
            dimension_numbers=("NHWC", "HWIO", "NHWC"))
        return y + b

    names = list(x_dict.keys())
    xs = [jnp.transpose(x_dict[k], (0, 2, 3, 1)) for k in names]

    def inner(i, x):
        w = params["inner_w"][i][None, None]  # (1,1,Cin,Cout)
        return conv(x, w, params["inner_b"][i], "VALID")

    def layer(i, x):
        return conv(x, params["layer_w"][i], params["layer_b"][i],
                    [(1, 1), (1, 1)])

    last_inner = inner(len(xs) - 1, xs[-1])
    results = [layer(len(xs) - 1, last_inner)]
    for idx in range(len(xs) - 2, -1, -1):
        lat = inner(idx, xs[idx])
        td = nearest_upsample_nhwc(last_inner, xs[idx].shape[1:3])
        last_inner = lat + td
        results.insert(0, layer(idx, last_inner))
    return OrderedDict(
        (k, jnp.transpose(v, (0, 3, 1, 2))) for k, v in zip(names, results))


# --------------------------------- main --------------------------------------

if __name__ == "__main__":
    key = jax.random.PRNGKey(0)

    in_channels_list = [4, 8, 16]
    out_channels = 8

    k0, k1, k2, kp = jax.random.split(key, 4)
    x = OrderedDict()
    x["feat0"] = jax.random.normal(k0, (2, 4, 16, 16), jnp.float32)   # NCHW
    x["feat1"] = jax.random.normal(k1, (2, 8, 8, 8), jnp.float32)
    x["feat2"] = jax.random.normal(k2, (2, 16, 4, 4), jnp.float32)

    params = init_fpn_params(kp, in_channels_list, out_channels)

    out = fpn_forward(x, params)
    jax.block_until_ready(list(out.values()))

    # sanity checks against a pure-JAX reference
    ref = _ref_fpn_forward(x, params)
    for name in x:
        assert out[name].shape == (x[name].shape[0], out_channels,
                                   x[name].shape[2], x[name].shape[3])
        np.testing.assert_allclose(np.asarray(out[name]), np.asarray(ref[name]),
                                   rtol=1e-3, atol=1e-3)

    print("KERNEL_OK")
</pallas_src>

<mosaic_0001>
module attributes {stable_mosaic.version = 11 : i64} {
  func.func @_conv1x1_kernel(%arg0: i32, %arg1: memref<32x16xf32, #tpu.memory_space<vmem>>, %arg2: memref<16x8xf32, #tpu.memory_space<vmem>>, %arg3: memref<1x8xf32, #tpu.memory_space<vmem>>, %arg4: memref<32x8xf32, #tpu.memory_space<vmem>>) attributes {dimension_semantics = [#tpu.dimension_semantics<parallel>], iteration_bounds = array<i64: 1>, scalar_prefetch = 0 : i64, scratch_operands = 0 : i64, tpu.core_type = #tpu.core_type<tc>, window_params = [{transform_indices = @transform_0, window_bounds = array<i64: 32, 16>}, {pipeline_mode = #tpu.pipeline_mode<synchronous>, transform_indices = @transform_1, window_bounds = array<i64: 16, 8>}, {pipeline_mode = #tpu.pipeline_mode<synchronous>, transform_indices = @transform_2, window_bounds = array<i64: 1, 8>}, {transform_indices = @transform_3, window_bounds = array<i64: 32, 8>}]} {
    %c0 = arith.constant 0 : index
    %c0_0 = arith.constant 0 : index
    %0 = vector.load %arg1[%c0, %c0_0] : memref<32x16xf32, #tpu.memory_space<vmem>>, vector<32x16xf32>
    %c0_1 = arith.constant 0 : index
    %c0_2 = arith.constant 0 : index
    %1 = vector.load %arg2[%c0_1, %c0_2] : memref<16x8xf32, #tpu.memory_space<vmem>>, vector<16x8xf32>
    %cst = arith.constant dense<0.000000e+00> : vector<32x8xf32>
    %2 = tpu.matmul %0, %1, %cst {dimension_numbers = #tpu.dot_dimension_numbers<[1], [0], [0], [1], [0, 0, 1, 1], [], []>} : vector<32x16xf32>, vector<16x8xf32>, vector<32x8xf32> -> vector<32x8xf32>
    %c0_3 = arith.constant 0 : index
    %c0_4 = arith.constant 0 : index
    %3 = vector.load %arg3[%c0_3, %c0_4] : memref<1x8xf32, #tpu.memory_space<vmem>>, vector<1x8xf32>
    %4 = vector.broadcast %3 : vector<1x8xf32> to vector<32x8xf32>
    %5 = arith.addf %2, %4 : vector<32x8xf32>
    %c0_5 = arith.constant 0 : index
    %c0_6 = arith.constant 0 : index
    %6 = vector.load %arg4[%c0_5, %c0_6] : memref<32x8xf32, #tpu.memory_space<vmem>>, vector<32x8xf32>
    tpu.vector_store %arg4[%c0_5, %c0_6], %5 {strides = array<i32>} : memref<32x8xf32, #tpu.memory_space<vmem>>, vector<32x8xf32>,
    return
  }
  func.func @transform_0(%arg0: i32) -> (i32, i32) {
    %c0_i32 = arith.constant 0 : i32
    %c0_i32_0 = arith.constant 0 : i32
    return %arg0, %c0_i32 : i32, i32
  }
  func.func @transform_1(%arg0: i32) -> (i32, i32) {
    %c0_i32 = arith.constant 0 : i32
    %c0_i32_0 = arith.constant 0 : i32
    %c0_i32_1 = arith.constant 0 : i32
    return %c0_i32, %c0_i32_0 : i32, i32
  }
  func.func @transform_2(%arg0: i32) -> (i32, i32) {
    %c0_i32 = arith.constant 0 : i32
    %c0_i32_0 = arith.constant 0 : i32
    %c0_i32_1 = arith.constant 0 : i32
    return %c0_i32, %c0_i32_0 : i32, i32
  }
  func.func @transform_3(%arg0: i32) -> (i32, i32) {
    %c0_i32 = arith.constant 0 : i32
    %c0_i32_0 = arith.constant 0 : i32
    return %arg0, %c0_i32 : i32, i32
  }
}

</mosaic_0001>

<bundles_post_ra>
// kernel: tpu_custom_call.1
= control target key start
LH: loop header
LB: loop body
LE: loop exit
PB: predicated region body
PF: predicated region fallthrough
CT: control target
= control target key end

     0   :  { %vm27_vm0 = vcmask 130048   ;;  %vm125_vm1 = vcmask 64512   ;;  %s214_s1 = inlined_call_operand.vmem [shape: f32[16,8], index: 1, kind: input, shape index: {}]   ;;  %s215_s0 = inlined_call_operand.vmem [shape: f32[32,16], index: 0, kind: input, shape index: {}]   ;;  %s216_s2 = inlined_call_operand.vmem [shape: f32[1,8], index: 2, kind: input, shape index: {}]   ;;  %s217_s3 = inlined_call_operand.vmem [shape: f32[32,8], index: 3, kind: output, shape index: {}]  }
   0x1   :  { %v18_v0 = vld [vmem:[%s214_s1] sm:$0xff]  ;;  %v19_v1 = vld [vmem:[%s214_s1 + $0x8] sm:$0xff]  ;;  %v16_v4 = vld [vmem:[%s215_s0 + $0x10] sm:$0xff] }
   0x2   :  { %v14_v2 = vld [vmem:[%s215_s0] sm:$0xff]  ;;  %v155_v3 = vpack.c.bf16 %v19_v1, %v18_v0  ;;  %152 = vmatprep.mubr.msk.f32.mxu1 %vm27_vm0, %v16_v4  ;;  %v15_v5 = vld [vmem:[%s215_s0 + $0x8] sm:$0xff]  ;;  %v17_v6 = vld [vmem:[%s215_s0 + $0x18] sm:$0xff] }
   0x3   :  { %149 = vmatprep.mubr.msk.f32.mxu0 %vm27_vm0, %v14_v2  ;;  %v134_v7 = vld [vmem:[%s216_s2] ss:$0 sm:$0xff] }
   0x4   :  { %156 = vmatprep.subr.bf16.mxu0 %v155_v3  ;;  %159 = vmatprep.subr.bf16.mxu1 %v155_v3 }
   0x5   :  { %158 = vmatpush3.bf16.msra.mxu0 %v155_v3  ;;  %160 = vmatpush3.bf16.msra.mxu1 %v155_v3 }
   0x8   :  { %150 = vmatmul.mubr.msk.f32.vlgmr.msra.gmra.mrb[0].mxu0 %vm27_vm0, %v15_v5  ;;  %153 = vmatmul.mubr.msk.f32.vlgmr.msra.gmra.mrb[0].mxu1 %vm27_vm0, %v17_v6 }
  0xdb   :  { %v151_v8 = vpop.f32.mrb[0].mxu0  ;;  %v154_v9 = vpop.f32.mrb[0].mxu1 }
  0xdc   :  { %v112_v10 = vadd.f32 %v151_v8, %v134_v7  ;;  %v122_v11 = vadd.f32 %v154_v9, %v134_v7  ;;  %v106_v12 = vpop.f32.mrb[1].mxu0  ;;  %v116_v13 = vpop.f32.mrb[1].mxu1 }
  0xdd   :  { %v107_v14 = vadd.f32 %v134_v7, %v106_v12  ;;  %v117_v15 = vadd.f32 %v134_v7, %v116_v13 }
  0xde   :  { %127 = vst.msk [vmem:[%s217_s3 + $0x8] sm:$0xff] %vm125_vm1, %v112_v10  ;;  %129 = vst.msk [vmem:[%s217_s3 + $0x18] sm:$0xff] %vm125_vm1, %v122_v11 }
  0xdf   :  { %126 = vst.msk [vmem:[%s217_s3] sm:$0xff] %vm125_vm1, %v107_v14  ;;  %128 = vst.msk [vmem:[%s217_s3 + $0x10] sm:$0xff] %vm125_vm1, %v117_v15 }

</bundles_post_ra>
